<compile_context>
chip_gen: v7x
topology: tpu7x:2x2x1
jax: 0.10.0
libtpu: 0.0.40
codegen_flags: <defaults>
</compile_context>

<pallas_src>
import functools

import jax
import jax.numpy as jnp
from jax import lax
from jax.experimental import pallas as pl
from jax.experimental.pallas import tpu as pltpu


def _logitnorm_loss_kernel(x_ref, tgt_ref, out_ref, acc_ref, *, t, n_rows,
                           block_n, blocks_per_core):
    o = pl.program_id(0)          # "parallel" core axis
    i = pl.program_id(1)          # "arbitrary" reduction axis

    @pl.when(i == 0)
    def _():
        acc_ref[...] = jnp.zeros_like(acc_ref)

    # Logical block id.  It may exceed the last real block (redundant grid slots
    # on the parallel axis) -- every row of such a block is masked below.
    blk = o * blocks_per_core + i
    row0 = blk * block_n

    x = x_ref[...].astype(jnp.float32)                               # (block_n, C)
    row_ids = row0 + lax.broadcasted_iota(jnp.int32, (block_n, 1), 0)
    valid = row_ids < n_rows                                         # (block_n, 1)
    # Mask the (possibly garbage) out-of-bounds tail BEFORE sqrt/exp so no
    # NaN/Inf can be produced from unspecified data.
    x = jnp.where(valid, x, 0.0)

    c = x.shape[-1]
    ones_col = jnp.ones((c, 1), jnp.float32)

    # ||x||_2 + eps; row reduction routed through the otherwise-idle MXU.
    sumsq = jnp.dot(x * x, ones_col, preferred_element_type=jnp.float32)
    norms = jnp.sqrt(sumsq) + 1e-07
    # Fold 1/||x|| and 1/t into one per-row scale (one reciprocal, one multiply).
    inv_scale = pl.reciprocal(norms * jnp.float32(t), approx=False)
    z = x * inv_scale                                                # logit_norm

    # Numerically-stable log-sum-exp per row (exp-sum also on the MXU).
    m = jnp.max(z, axis=-1, keepdims=True)
    esum = jnp.dot(jnp.exp(z - m), ones_col, preferred_element_type=jnp.float32)
    lse = m + jnp.log(esum)                                          # (block_n, 1)

    # Target logit via a one-hot select built from a lane iota.
    tgt = tgt_ref[...]                                               # (block_n, 1)
    cls_ids = lax.broadcasted_iota(jnp.int32, z.shape, 1)            # (block_n, C)
    tgt_logit = jnp.sum(jnp.where(cls_ids == tgt, z, 0.0),
                        axis=-1, keepdims=True)                      # (block_n, 1)

    per_row = jnp.where(valid, lse - tgt_logit, 0.0)
    acc_ref[...] += jnp.sum(per_row, axis=0, keepdims=True)          # (1, 1)

    @pl.when(i == pl.num_programs(1) - 1)
    def _():
        # Lane-dense (8, 128) writeback of this core's partial sum.
        out_ref[...] = jnp.broadcast_to(acc_ref[...], out_ref.shape)


def _auto_block_n(n_rows, n_cols, itemsize):
    """Byte-budgeted row-block size (no arbitrary row cap)."""
    # ~20 MiB of VMEM for: 2x double-buffered x tiles, ~6 live f32 (block_n, C)
    # temporaries (x, x*x, z, exp, one-hot select, int32 iota), plus the
    # 128-lane-padded (block_n, 1) int32 target block (x2 buffers).
    budget = 20 * 1024 * 1024
    per_row = n_cols * (2 * itemsize + 6 * 4) + 2 * 128 * 4
    bn = budget // max(per_row, 1)
    bn = max(8, (bn // 8) * 8)
    bn = min(bn, max(8, ((n_rows + 7) // 8) * 8))   # never bigger than the problem
    if bn >= 128:
        bn = (bn // 128) * 128                       # lane/sublane friendly
    return int(bn)


def _vmem_limit_bytes():
    try:
        kind = jax.devices()[0].device_kind.lower()
    except Exception:
        kind = ""
    # v7x: 64 MiB VMEM per TensorCore -> leave headroom; v5e/v6e: 128 MiB.
    if "v7" in kind:
        return 40 * 1024 * 1024
    return 64 * 1024 * 1024


def logitnorm_loss(x, target, t=1.0, block_n=None):
    """x: (N, C) float logits, target: (N,) int class ids -> scalar f32 loss."""
    n, c = x.shape
    itemsize = jnp.dtype(x.dtype).itemsize

    if block_n is None:
        block_n = _auto_block_n(n, c, itemsize)
    else:
        block_n = max(8, (int(block_n) // 8) * 8)

    nblocks = -(-n // block_n)              # real blocks covering the N rows
    n_outer = min(2, nblocks)               # per-core partial sums (2 TCs on v7x)
    bpc = -(-nblocks // n_outer)            # inner (reduction) grid extent

    # Only the tiny 1-D int32 target is padded (cheap); x is NOT padded.
    total_rows = n_outer * bpc * block_n
    tgt = target.astype(jnp.int32)
    if total_rows != n:
        tgt = jnp.pad(tgt, (0, total_rows - n))
    tgt = tgt.reshape(total_rows, 1)

    kernel = functools.partial(
        _logitnorm_loss_kernel, t=float(t), n_rows=n,
        block_n=block_n, blocks_per_core=bpc)

    def x_map(o, i):
        # Clamp redundant grid slots onto the last real block so the DMA always
        # stays (at least partially) inside the array; the kernel masks rows.
        return (jnp.minimum(o * bpc + i, nblocks - 1), 0)

    def tgt_map(o, i):
        return (o * bpc + i, 0)

    out = pl.pallas_call(
        kernel,
        out_shape=jax.ShapeDtypeStruct((n_outer * 8, 128), jnp.float32),
        grid=(n_outer, bpc),
        in_specs=[
            pl.BlockSpec((block_n, c), x_map),
            pl.BlockSpec((block_n, 1), tgt_map),
        ],
        out_specs=pl.BlockSpec((8, 128), lambda o, i: (o, 0)),
        scratch_shapes=[pltpu.VMEM((1, 1), jnp.float32)],
        compiler_params=pltpu.CompilerParams(
            dimension_semantics=("parallel", "arbitrary"),
            vmem_limit_bytes=_vmem_limit_bytes(),
        ),
    )(x, tgt)

    partials = out.reshape(n_outer, 8, 128)[:, 0, 0]     # one value per core
    return jnp.sum(partials) / jnp.float32(n)


def _reference(x, target, t=1.0):
    x = x.astype(jnp.float32)
    norms = jnp.sqrt(jnp.sum(x * x, axis=-1, keepdims=True)) + 1e-07
    z = (x / norms) / t
    logp = jax.nn.log_softmax(z, axis=-1)
    nll = -jnp.take_along_axis(logp, target[:, None].astype(jnp.int32), axis=-1)
    return jnp.mean(nll)


if __name__ == "__main__":
    key = jax.random.PRNGKey(0)
    kx, kt, kx2, kt2 = jax.random.split(key, 4)

    # Case 1: small batch, single block (matches the module's expected use).
    N, C = 8, 32
    x = jax.random.normal(kx, (N, C), dtype=jnp.float32) * 3.0
    target = jax.random.randint(kt, (N,), 0, C, dtype=jnp.int32)

    loss = logitnorm_loss(x, target, t=1.0)
    jax.block_until_ready(loss)
    ref = _reference(x, target, t=1.0)
    assert jnp.allclose(loss, ref, atol=1e-5, rtol=1e-5), (loss, ref)

    # Case 2: multi-block grid, ragged (masked) last block, two per-core
    # partial sums, non-unit temperature -- no jnp.pad of x anywhere.
    N2, C2 = 37, 32
    x2 = jax.random.normal(kx2, (N2, C2), dtype=jnp.float32) * 2.0
    target2 = jax.random.randint(kt2, (N2,), 0, C2, dtype=jnp.int32)

    loss2 = logitnorm_loss(x2, target2, t=0.5, block_n=16)
    jax.block_until_ready(loss2)
    ref2 = _reference(x2, target2, t=0.5)
    assert jnp.allclose(loss2, ref2, atol=1e-5, rtol=1e-5), (loss2, ref2)

    print("KERNEL_OK")
</pallas_src>

<mosaic_0001>
module attributes {stable_mosaic.version = 11 : i64} {
  func.func @_logitnorm_loss_kernel(%arg0: i32, %arg1: i32, %arg2: memref<8x32xf32, #tpu.memory_space<vmem>>, %arg3: memref<8x1xi32, #tpu.memory_space<vmem>>, %arg4: memref<8x128xf32, #tpu.memory_space<vmem>>, %arg5: memref<1x1xf32, #tpu.memory_space<vmem>>) attributes {dimension_semantics = [#tpu.dimension_semantics<parallel>, #tpu.dimension_semantics<arbitrary>], iteration_bounds = array<i64: 1, 1>, scalar_prefetch = 0 : i64, scratch_operands = 1 : i64, tpu.core_type = #tpu.core_type<tc>, window_params = [{transform_indices = @transform_0, window_bounds = array<i64: 8, 32>}, {transform_indices = @transform_1, window_bounds = array<i64: 8, 1>}, {transform_indices = @transform_2, window_bounds = array<i64: 8, 128>}]} {
    %c0_i32 = arith.constant 0 : i32
    %0 = arith.cmpi eq, %arg1, %c0_i32 : i32
    %1 = arith.extui %0 : i1 to i32
    %c0_i32_0 = arith.constant 0 : i32
    %2 = arith.cmpi ne, %1, %c0_i32_0 : i32
    scf.if %2 {
      %cst_21 = arith.constant 0.000000e+00 : f32
      %54 = vector.broadcast %cst_21 : f32 to vector<1x1xf32>
      %c0_22 = arith.constant 0 : index
      %c0_23 = arith.constant 0 : index
      %55 = vector.load %arg5[%c0_22, %c0_23] : memref<1x1xf32, #tpu.memory_space<vmem>>, vector<1x1xf32>
      tpu.vector_store %arg5[%c0_22, %c0_23], %54 {strides = array<i32>} : memref<1x1xf32, #tpu.memory_space<vmem>>, vector<1x1xf32>,
    } else {
    }
    %c1_i32 = arith.constant 1 : i32
    %3 = arith.muli %arg0, %c1_i32 : i32
    %4 = arith.addi %3, %arg1 : i32
    %c8_i32 = arith.constant 8 : i32
    %5 = arith.muli %4, %c8_i32 : i32
    %c0 = arith.constant 0 : index
    %c0_1 = arith.constant 0 : index
    %6 = vector.load %arg2[%c0, %c0_1] : memref<8x32xf32, #tpu.memory_space<vmem>>, vector<8x32xf32>
    %7 = tpu.iota {dimensions = array<i32: 0>} : vector<8x1xi32>
    %8 = vector.broadcast %5 : i32 to vector<8x1xi32>
    %9 = arith.addi %8, %7 : vector<8x1xi32>
    %c8_i32_2 = arith.constant 8 : i32
    %10 = vector.broadcast %c8_i32_2 : i32 to vector<8x1xi32>
    %11 = arith.cmpi slt, %9, %10 : vector<8x1xi32>
    %cst = arith.constant 0.000000e+00 : f32
    %12 = vector.shape_cast %11 : vector<8x1xi1> to vector<8x1xi1>
    %13 = vector.broadcast %12 : vector<8x1xi1> to vector<8x32xi1>
    %14 = vector.broadcast %cst : f32 to vector<8x32xf32>
    %15 = arith.select %13, %6, %14 : vector<8x32xi1>, vector<8x32xf32>
    %cst_3 = arith.constant 1.000000e+00 : f32
    %16 = vector.broadcast %cst_3 : f32 to vector<32x1xf32>
    %17 = arith.mulf %15, %15 : vector<8x32xf32>
    %cst_4 = arith.constant dense<0.000000e+00> : vector<8x1xf32>
    %18 = tpu.matmul %17, %16, %cst_4 {dimension_numbers = #tpu.dot_dimension_numbers<[1], [0], [0], [1], [0, 0, 1, 1], [], []>} : vector<8x32xf32>, vector<32x1xf32>, vector<8x1xf32> -> vector<8x1xf32>
    %19 = math.sqrt %18 : vector<8x1xf32>
    %cst_5 = arith.constant 1.000000e-07 : f32
    %20 = vector.broadcast %cst_5 : f32 to vector<8x1xf32>
    %21 = arith.addf %19, %20 : vector<8x1xf32>
    %cst_6 = arith.constant 1.000000e+00 : f32
    %22 = vector.broadcast %cst_6 : f32 to vector<8x1xf32>
    %23 = arith.mulf %21, %22 : vector<8x1xf32>
    %24 = tpu.reciprocal %23 : vector<8x1xf32> -> vector<8x1xf32>
    %25 = vector.broadcast %24 : vector<8x1xf32> to vector<8x32xf32>
    %26 = arith.mulf %15, %25 : vector<8x32xf32>
    %cst_7 = arith.constant dense<0xFF800000> : vector<8xf32>
    %27 = vector.multi_reduction <maximumf>, %26, %cst_7 [1] : vector<8x32xf32> to vector<8xf32>
    %28 = vector.shape_cast %27 : vector<8xf32> to vector<8x1xf32>
    %29 = vector.broadcast %28 : vector<8x1xf32> to vector<8x32xf32>
    %30 = arith.subf %26, %29 : vector<8x32xf32>
    %31 = math.exp %30 : vector<8x32xf32>
    %cst_8 = arith.constant dense<0.000000e+00> : vector<8x1xf32>
    %32 = tpu.matmul %31, %16, %cst_8 {dimension_numbers = #tpu.dot_dimension_numbers<[1], [0], [0], [1], [0, 0, 1, 1], [], []>} : vector<8x32xf32>, vector<32x1xf32>, vector<8x1xf32> -> vector<8x1xf32>
    %33 = math.log %32 : vector<8x1xf32>
    %34 = arith.addf %28, %33 : vector<8x1xf32>
    %c0_9 = arith.constant 0 : index
    %c0_10 = arith.constant 0 : index
    %35 = vector.load %arg3[%c0_9, %c0_10] : memref<8x1xi32, #tpu.memory_space<vmem>>, vector<8x1xi32>
    %36 = tpu.iota {dimensions = array<i32: 1>} : vector<8x32xi32>
    %37 = vector.broadcast %35 : vector<8x1xi32> to vector<8x32xi32>
    %38 = arith.cmpi eq, %36, %37 : vector<8x32xi32>
    %cst_11 = arith.constant 0.000000e+00 : f32
    %39 = vector.broadcast %cst_11 : f32 to vector<8x32xf32>
    %40 = arith.select %38, %26, %39 : vector<8x32xi1>, vector<8x32xf32>
    %cst_12 = arith.constant dense<0.000000e+00> : vector<8xf32>
    %41 = vector.multi_reduction <add>, %40, %cst_12 [1] : vector<8x32xf32> to vector<8xf32>
    %42 = vector.shape_cast %41 : vector<8xf32> to vector<8x1xf32>
    %43 = arith.subf %34, %42 : vector<8x1xf32>
    %cst_13 = arith.constant 0.000000e+00 : f32
    %44 = vector.broadcast %cst_13 : f32 to vector<8x1xf32>
    %45 = arith.select %11, %43, %44 : vector<8x1xi1>, vector<8x1xf32>
    %c0_14 = arith.constant 0 : index
    %c0_15 = arith.constant 0 : index
    %46 = vector.load %arg5[%c0_14, %c0_15] : memref<1x1xf32, #tpu.memory_space<vmem>>, vector<1x1xf32>
    %cst_16 = arith.constant dense<0.000000e+00> : vector<1xf32>
    %47 = vector.multi_reduction <add>, %45, %cst_16 [0] : vector<8x1xf32> to vector<1xf32>
    %48 = vector.shape_cast %47 : vector<1xf32> to vector<1x1xf32>
    %49 = arith.addf %46, %48 : vector<1x1xf32>
    %c0_17 = arith.constant 0 : index
    %c0_18 = arith.constant 0 : index
    %50 = vector.load %arg5[%c0_17, %c0_18] : memref<1x1xf32, #tpu.memory_space<vmem>>, vector<1x1xf32>
    tpu.vector_store %arg5[%c0_17, %c0_18], %49 {strides = array<i32>} : memref<1x1xf32, #tpu.memory_space<vmem>>, vector<1x1xf32>,
    %c0_i32_19 = arith.constant 0 : i32
    %51 = arith.cmpi eq, %arg1, %c0_i32_19 : i32
    %52 = arith.extui %51 : i1 to i32
    %c0_i32_20 = arith.constant 0 : i32
    %53 = arith.cmpi ne, %52, %c0_i32_20 : i32
    scf.if %53 {
      %c0_21 = arith.constant 0 : index
      %c0_22 = arith.constant 0 : index
      %54 = vector.load %arg5[%c0_21, %c0_22] : memref<1x1xf32, #tpu.memory_space<vmem>>, vector<1x1xf32>
      %55 = vector.shape_cast %54 : vector<1x1xf32> to vector<1x1xf32>
      %56 = vector.broadcast %55 : vector<1x1xf32> to vector<8x128xf32>
      %c0_23 = arith.constant 0 : index
      %c0_24 = arith.constant 0 : index
      %57 = vector.load %arg4[%c0_23, %c0_24] : memref<8x128xf32, #tpu.memory_space<vmem>>, vector<8x128xf32>
      tpu.vector_store %arg4[%c0_23, %c0_24], %56 {strides = array<i32>} : memref<8x128xf32, #tpu.memory_space<vmem>>, vector<8x128xf32>,
    } else {
    }
    return
  }
  func.func @transform_0(%arg0: i32, %arg1: i32) -> (i32, i32) {
    %c1_i32 = arith.constant 1 : i32
    %0 = arith.muli %arg0, %c1_i32 : i32
    %1 = arith.addi %0, %arg1 : i32
    %c0_i32 = arith.constant 0 : i32
    %2 = arith.minsi %1, %c0_i32 : i32
    %c0_i32_0 = arith.constant 0 : i32
    %c0_i32_1 = arith.constant 0 : i32
    return %2, %c0_i32_0 : i32, i32
  }
  func.func @transform_1(%arg0: i32, %arg1: i32) -> (i32, i32) {
    %c1_i32 = arith.constant 1 : i32
    %0 = arith.muli %arg0, %c1_i32 : i32
    %1 = arith.addi %0, %arg1 : i32
    %c0_i32 = arith.constant 0 : i32
    %c0_i32_0 = arith.constant 0 : i32
    return %1, %c0_i32 : i32, i32
  }
  func.func @transform_2(%arg0: i32, %arg1: i32) -> (i32, i32) {
    %c0_i32 = arith.constant 0 : i32
    %c0_i32_0 = arith.constant 0 : i32
    return %arg0, %c0_i32 : i32, i32
  }
}

</mosaic_0001>

<bundles_post_ra>
// kernel: tpu_custom_call.1
= control target key start
LH: loop header
LB: loop body
LE: loop exit
PB: predicated region body
PF: predicated region fallthrough
CT: control target
= control target key end

     0   :  { %7 = vsyncpa [#allocation4], 0  ;;  %s492_s0 = inlined_call_operand.hbm [shape: f32[8,32], index: 0, kind: input, shape index: {}]   ;;  %s493_s1 = inlined_call_operand.hbm [shape: s32[8,1], index: 1, kind: input, shape index: {}]   ;;  %s494_s2 = inlined_call_operand.hbm [shape: f32[8,128], index: 2, kind: output, shape index: {}]  }
   0x1   :  { %8 = vsyncpa [#allocation7], 0 }
   0x2   :  { %9 = vsyncpa [#allocation5], 0  ;;  %s427_s9 = smov [#allocation3]   ;;  %s428_s11 = smov [#allocation6]  }
   0x3   :  { %s21_s10 = sshll.u32 %s427_s9, 4  ;;  %s34_s12 = sshll.u32 %s428_s11, 4  ;;  %s22_s10 = int_to_ptr.vmem [resolvable:$true] %s21_s10  ;;  %s35_s12 = int_to_ptr.vmem [resolvable:$true] %s34_s12 }
   0x4   :  { %s355_s15 = scalar_lea.hbm %s492_s0, 128 }
   0x5   :  { %p356_p0 = scmp.ne.s32.totalorder %s492_s0, %s355_s15  ;;  %p359_p1 = scmp.lt.u32.totalorder %s355_s15, %s492_s0 }
   0x7   :  { %p361_p2 = pnand %p359_p1, %p356_p0 }
   0x9   :  { %364 = shalt.err (!%p361_p2)
}
   0xa   :  { %s365_s20 = scalar_lea.vmem %s22_s10, 128  ;;  %p370_p4 = scmp.lt.s32.totalorder %s22_s10, %s22_s10 }
   0xb   :  { %p366_p3 = scmp.ne.s32.totalorder %s22_s10, %s365_s20  ;;  %p371_p5 = scmp.lt.s32.totalorder %s365_s20, %s365_s20 }
   0xd   :  { %p372_p6 = por %p371_p5, %p370_p4 }
   0xf   :  { %p373_p7 = pnand %p372_p6, %p366_p3 }
  0x11   :  { %376 = shalt.err (!%p373_p7)
}
  0x12   :  { %24 = dma.hbm_to_vmem [thread:$0]  %s492_s0, 128, %s22_s10, [#allocation4]  }
  0x13   :  { %s377_s25 = scalar_lea.hbm %s493_s1, 128 }
  0x14   :  { %p378_p8 = scmp.ne.s32.totalorder %s493_s1, %s377_s25  ;;  %p381_p9 = scmp.lt.u32.totalorder %s377_s25, %s493_s1 }
  0x16   :  { %p383_p10 = pnand %p381_p9, %p378_p8 }
  0x18   :  { %386 = shalt.err (!%p383_p10)
}
  0x19   :  { %s387_s30 = scalar_lea.vmem %s35_s12, 128  ;;  %p392_p12 = scmp.lt.s32.totalorder %s35_s12, %s35_s12 }
  0x1a   :  { %p388_p11 = scmp.ne.s32.totalorder %s35_s12, %s387_s30  ;;  %p393_p13 = scmp.lt.s32.totalorder %s387_s30, %s387_s30 }
  0x1c   :  { %p394_p0 = por %p393_p13, %p392_p12 }
  0x1e   :  { %p395_p1 = pnand %p394_p0, %p388_p11 }
  0x20   :  { %398 = shalt.err (!%p395_p1)
}
  0x21   :  { %37 = dma.hbm_to_vmem [thread:$0]  %s493_s1, 128, %s35_s12, [#allocation7]  }
  0x22   :  { %421 = dma.done.wait [#allocation4], 128  }
  0x23   :  { %422 = vsyncadd [#allocation4], 4294967168 }
  0x24   :  { %423 = dma.done.wait [#allocation7], 128  }
  0x25   :  { %424 = vsyncadd [#allocation7], 4294967168  ;;  %vm52_vm0 = vcmask 0   ;;  %v429_v0 = vmov 0.0|0.0   ;;  %v430_v1 = vmov 1.0|1.0   ;;  %v238_v16 = vlaneseq }
  0x26   :  { %329 = vmatprep.subr.bf16.mxu0 %v429_v0  ;;  %333 = vmatprep.subr.bf16.mxu1 %v429_v0  ;;  %v431_v2 = vmov 0.0   ;;  %vm432_vm1 = vmmov 0   ;;  %v56_v3 = vld [vmem:[#allocation3] sm:$0xff]  ;;  %vm66_vm2 = vcmask 261120   ;;  %v433_v5 = vmov 0   ;;  %v237_v6 = vld [vmem:[#allocation6] sm:$0xff] }
  0x27   :  { %330 = vmatpush3.bf16.msra.mxu0 %v430_v1  ;;  %53 = vst.msk [vmem:[#allocation2] sm:$0x1] %vm52_vm0, %v431_v2  ;;  %315 = vmatprep.mubr.msk.f32.mxu0 %vm432_vm1, %v431_v2  ;;  %v65_v4 = vmul.f32 %v56_v3, %v56_v3  ;;  %v239_v17 = vand.u32 127, %v238_v16  ;;  %vm251_vm6 = vcmask 7168   ;;  %s434_s1 = smov [#allocation8]  }
  0x28   :  { %331 = vmatprep.subr.bf16.mxu0 %v429_v0  ;;  %334 = vmatpush3.bf16.msra.mxu1 %v430_v1  ;;  %s282_s4 = sshll.u32 %s434_s1, 4  ;;  %s283_s4 = int_to_ptr.vmem [resolvable:$true] %s282_s4 }
  0x29   :  { %335 = vmatprep.subr.bf16.mxu1 %v429_v0  ;;  %326 = vmatprep.mubr.msk.f32.mxu1 %vm432_vm1, %v431_v2  ;;  %s399_s5 = scalar_lea.vmem %s283_s4, 128  ;;  %p404_p3 = scmp.lt.s32.totalorder %s283_s4, %s283_s4 }
  0x2a   :  { %345 = vset.pattern.permute.xlu0 %v433_v5  ;;  %346 = vset.pattern.permute.xlu1 %v433_v5  ;;  %p400_p2 = scmp.ne.s32.totalorder %s283_s4, %s399_s5  ;;  %p405_p4 = scmp.lt.s32.totalorder %s399_s5, %s399_s5 }
  0x2b   :  { %332 = vmatpush3.bf16.msra.mxu0 %v430_v1  ;;  %241 = vperm.xlu1 %346, %v237_v6  }
  0x2c   :  { %336 = vmatpush3.bf16.msra.mxu1 %v430_v1  ;;  %p406_p5 = por %p405_p4, %p404_p3 }
  0x2e   :  { %316 = vmatmul.mubr.msk.f32.vlgmr.msra.gmra.mrb[0].mxu0 %vm66_vm2, %v65_v4  ;;  %v250_v41 = vld [vmem:[#allocation2] sm:$0x1]  ;;  %p407_p6 = pnand %p406_p5, %p400_p2 }
  0xaa   :  { %v242_v18 = vpop.permute.xlu1 %241 }
  0xab   :  { %vm243_vm5 = vcmp.eq.s32.totalorder %v239_v17, %v242_v18 }
 0x101   :  { %v136_v7 = vpop.f32.mrb[0].mxu0 }
 0x102   :  { %347 = vrsqrt.f32 %v136_v7  ;;  %v317_v8 = vpop.f32.mrb[1].mxu0  ;;  %vm142_vm3 = vcmp.eq.f32.partialorder %v136_v7, inf  ;;  %v145_v11 = vand.u32 2147483648, %v136_v7  ;;  %vm144_vm4 = vcmp.eq.f32.partialorder %v136_v7, 0.0 }
 0x10c   :  { %v348_v9 = vpop.eup %347 }
 0x10d   :  { %v141_v10 = vmul.f32 %v348_v9, %v136_v7 }
 0x10f   :  { %v143_v12 = vsel %vm142_vm3, %v136_v7, %v141_v10 }
 0x110   :  { %v146_v13 = vsel %vm144_vm4, %v145_v11, %v143_v12 }
 0x111   :  { %v147_v14 = vadd.f32 1e-07, %v146_v13 }
 0x113   :  { %349 = vrcp.f32 %v147_v14 }
 0x11d   :  { %v350_v15 = vpop.eup %349 }
 0x11e   :  { %151 = vperm.xlu0 %345, %v350_v15  }
 0x19d   :  { %v152_v19 = vpop.permute.xlu0 %151 }
 0x19e   :  { %v154_v20 = vmul.f32 %v152_v19, %v56_v3 }
 0x1a0   :  { %v155_v21 = vsel %vm66_vm2, %v154_v20, -inf  ;;  %v244_v22 = vsel %vm243_vm5, %v154_v20, 0.0 }
 0x1a1   :  { %156 = vmax.xlane.f32.xlu0 %v155_v21  ;;  %v245_v23 = vsel %vm66_vm2, %v244_v22, 0.0 }
 0x1a2   :  { %246 = vadd.xlane.f32.xlu1 %v245_v23 }
 0x22e   :  { %v157_v24 = vpop.xlane.xlu0 %156 }
 0x22f   :  { %v158_v25 = vsub.f32 %v154_v20, %v157_v24  ;;  %v247_v33 = vpop.xlane.xlu1 %246 }
 0x231   :  { %v159_v26 = vmul.f32 1.442695, %v158_v25 }
 0x233   :  { %351 = vpow2.f32 %v159_v26 }
 0x23d   :  { %v352_v27 = vpop.eup %351 }
 0x23e   :  { %327 = vmatmul.mubr.msk.f32.vlgmr.msra.gmra.mrb[0].mxu1 %vm66_vm2, %v352_v27 }
 0x311   :  { %v230_v28 = vpop.f32.mrb[0].mxu1 }
 0x312   :  { %353 = vlog2.f32 %v230_v28  ;;  %v328_v29 = vpop.f32.mrb[1].mxu1 }
 0x31c   :  { %v354_v30 = vpop.eup %353 }
 0x31d   :  { %v235_v31 = vmul.f32 0.6931472, %v354_v30 }
 0x31f   :  { %v236_v32 = vadd.f32 %v235_v31, %v157_v24 }
 0x321   :  { %v248_v34 = vsub.f32 %v236_v32, %v247_v33 }
 0x323   :  { %v252_v35 = vsel %vm251_vm6, %v248_v34, 0.0 }
 0x324   :  { %v253_v36 = vrot.slane %v252_v35, 4 }
 0x326   :  { %v254_v37 = vadd.f32 %v253_v36, %v252_v35 }
 0x328   :  { %v255_v38 = vrot.slane %v254_v37, 2 }
 0x32a   :  { %v256_v39 = vadd.f32 %v255_v38, %v254_v37 }
 0x32c   :  { %v257_v40 = vrot.slane %v256_v39, 1 }
 0x32e   :  { %v258_v42 = vadd.f32 %v257_v40, %v256_v39 }
 0x330   :  { %v259_v43 = vadd.f32 %v258_v42, %v250_v41 }
 0x332   :  { %261 = vst.msk [vmem:[#allocation2] sm:$0x1] %vm52_vm0, %v259_v43 }
 0x339   :  { %v296_v44 = vld [vmem:[#allocation2] ss:$0 sm:$0xff] }
 0x33a   :  { %272 = vperm.xlu0 %345, %v296_v44  }
 0x3b9   :  { %v273_v45 = vpop.permute.xlu0 %272 }
 0x3ba   :  { %275 = vst [vmem:[#allocation8] sm:$0xff] %v273_v45 }
 0x3bb   :  { %410 = shalt.err (!%p407_p6)
}
 0x3bc   :  { %s411_s8 = scalar_lea.hbm %s494_s2, 128 }
 0x3bd   :  { %p412_p7 = scmp.ne.s32.totalorder %s494_s2, %s411_s8  ;;  %p415_p8 = scmp.lt.u32.totalorder %s411_s8, %s494_s2 }
 0x3bf   :  { %p417_p9 = pnand %p415_p8, %p412_p7 }
 0x3c1   :  { %420 = shalt.err (!%p417_p9)
}
 0x3c2   :  { %285 = dma.vmem_to_hbm [thread:$0]  %s283_s4, 128, %s494_s2, [#allocation5]  }
 0x3c3   :  { %425 = dma.done.wait [#allocation5], 128  }
 0x3c4   :  { %426 = vsyncadd [#allocation5], 4294967168 }
 0x3c5   :  { %289 = vsyncpa [#allocation4], 1 }
 0x3c6   :  { %290 = vsyncpa [#allocation7], 1 }
 0x3c7   :  { %291 = vsyncpa [#allocation5], 1 }

</bundles_post_ra>
